<compile_context>
chip_gen: v6e
topology: v6e:2x2x1
jax: 0.10.0
libtpu: 0.0.40
codegen_flags: <defaults>
</compile_context>

<pallas_src>
import functools

import jax
import jax.numpy as jnp
from jax import lax
from jax.experimental import pallas as pl
from jax.experimental.pallas import tpu as pltpu

LOG_STD_MIN = -10.0
LOG_STD_MAX = 2.0

_LANES = 128
_SUBLANES = 8


def _round_up(x, m):
    return (x + m - 1) // m * m


# --------------------------------------------------------------------------- #
# Parameter init (PyTorch nn.Linear convention) + packing into one VMEM slab. #
# --------------------------------------------------------------------------- #
def init_params(key, num_inputs, num_actions, hidden_size, init_w=0.003):
    """PyTorch-convention params: Linear weight (out, in), bias (out,), U(-init_w, init_w)."""
    ks = jax.random.split(key, 8)
    u = lambda k, shape: jax.random.uniform(k, shape, jnp.float32, -init_w, init_w)
    return {
        "w1": u(ks[0], (hidden_size, num_inputs)),
        "b1": u(ks[1], (hidden_size,)),
        "w2": u(ks[2], (hidden_size, hidden_size)),
        "b2": u(ks[3], (hidden_size,)),
        "wm": u(ks[4], (num_actions, hidden_size)),
        "bm": u(ks[5], (num_actions,)),
        "ws": u(ks[6], (num_actions, hidden_size)),
        "bs": u(ks[7], (num_actions,)),
    }


def pack_params(params, num_inputs, num_actions, hidden_size):
    """Pack all weights/biases into one lane-dense (rows, P) f32 slab.

    Weights are stored pre-transposed ([in, out]) and zero-padded to P=128 output
    lanes so every in-kernel matmul/store is lane-dense; the two heads are fused
    into one [wm | ws] block. Row offsets are multiples of 8 (sublane aligned).
    """
    NI, H, A = num_inputs, hidden_size, num_actions
    P = _round_up(max(H, 2 * A, _LANES), _LANES)
    ni_rows = _round_up(NI, _SUBLANES)

    off_w1 = 0
    off_b1 = off_w1 + ni_rows
    off_w2 = off_b1 + _SUBLANES
    off_b2 = off_w2 + P
    off_wh = off_b2 + _SUBLANES
    off_bh = off_wh + P
    rows = off_bh + _SUBLANES

    slab = jnp.zeros((rows, P), jnp.float32)
    slab = slab.at[off_w1:off_w1 + NI, 0:H].set(params["w1"].T)
    slab = slab.at[off_b1, 0:H].set(params["b1"])
    slab = slab.at[off_w2:off_w2 + H, 0:H].set(params["w2"].T)
    slab = slab.at[off_b2, 0:H].set(params["b2"])
    w_heads = jnp.concatenate([params["wm"].T, params["ws"].T], axis=1)  # (H, 2A)
    b_heads = jnp.concatenate([params["bm"], params["bs"]], axis=0)      # (2A,)
    slab = slab.at[off_wh:off_wh + H, 0:2 * A].set(w_heads)
    slab = slab.at[off_bh, 0:2 * A].set(b_heads)

    cfg = dict(ni=NI, h=H, a=A, p=P, rows=rows,
               off_w1=off_w1, off_b1=off_b1, off_w2=off_w2,
               off_b2=off_b2, off_wh=off_wh, off_bh=off_bh)
    return slab, cfg


# --------------------------------------------------------------------------- #
# Kernel: 3 fused MXU matmuls + VPU relu/bias/clip, one lane-dense output.    #
# --------------------------------------------------------------------------- #
def _policy_kernel(state_ref, p_ref, out_ref, *, cfg):
    NI, A, P = cfg["ni"], cfg["a"], cfg["p"]
    o_w1, o_b1 = cfg["off_w1"], cfg["off_b1"]
    o_w2, o_b2 = cfg["off_w2"], cfg["off_b2"]
    o_wh, o_bh = cfg["off_wh"], cfg["off_bh"]

    x = state_ref[...]                                                  # (TB, NI)

    # linear1 + ReLU (zero-padded weight lanes stay exactly 0 through ReLU)
    w1 = p_ref[o_w1:o_w1 + NI, :]                                       # (NI, P)
    b1 = p_ref[o_b1:o_b1 + 1, :]                                        # (1, P)
    h1 = jnp.maximum(jnp.dot(x, w1, preferred_element_type=jnp.float32) + b1, 0.0)

    # linear2 + ReLU
    w2 = p_ref[o_w2:o_w2 + P, :]                                        # (P, P)
    b2 = p_ref[o_b2:o_b2 + 1, :]
    h2 = jnp.maximum(jnp.dot(h1, w2, preferred_element_type=jnp.float32) + b2, 0.0)

    # fused heads: lanes [0, A) = mean, [A, 2A) = log_std, rest = zero padding
    wh = p_ref[o_wh:o_wh + P, :]                                        # (P, P)
    bh = p_ref[o_bh:o_bh + 1, :]
    out = jnp.dot(h2, wh, preferred_element_type=jnp.float32) + bh      # (TB, P)

    # clamp only the log_std lanes
    col = lax.broadcasted_iota(jnp.int32, out.shape, 1)
    is_log_std = (col >= A) & (col < 2 * A)
    out = jnp.where(is_log_std, jnp.clip(out, LOG_STD_MIN, LOG_STD_MAX), out)

    out_ref[...] = out.astype(out_ref.dtype)


# --------------------------------------------------------------------------- #
# Wrapper: batch-tiled grid, params resident, split/slice outputs.            #
# --------------------------------------------------------------------------- #
def policy_forward(state, slab, cfg, *, batch_tile=128):
    """state: (B, num_inputs) f32; slab/cfg from pack_params. Returns (mean, log_std)."""
    B, NI = state.shape
    assert NI == cfg["ni"], "state feature dim must match packed params"
    A, P, R = cfg["a"], cfg["p"], cfg["rows"]

    tb = min(_round_up(batch_tile, _SUBLANES), _round_up(B, _SUBLANES))
    b_pad = _round_up(B, tb)
    if b_pad != B:
        state = jnp.pad(state, ((0, b_pad - B), (0, 0)))

    kernel = functools.partial(_policy_kernel, cfg=cfg)
    out = pl.pallas_call(
        kernel,
        out_shape=jax.ShapeDtypeStruct((b_pad, P), jnp.float32),
        grid=(b_pad // tb,),
        in_specs=[
            pl.BlockSpec((tb, NI), lambda i: (i, 0)),   # batch tile of states
            pl.BlockSpec((R, P), lambda i: (0, 0)),     # param slab (constant block)
        ],
        out_specs=pl.BlockSpec((tb, P), lambda i: (i, 0)),  # lane-dense output
        compiler_params=pltpu.CompilerParams(
            dimension_semantics=("parallel",)),          # batch tiles split across TCs (v7x)
    )(state, slab)

    mean = out[:B, 0:A]
    log_std = out[:B, A:2 * A]   # clamp already applied in-kernel
    return mean, log_std


# --------------------------------------------------------------------------- #
# Pure-JAX reference (PyTorch Linear semantics) for correctness.              #
# --------------------------------------------------------------------------- #
def reference_forward(state, params):
    h1 = jnp.maximum(state @ params["w1"].T + params["b1"], 0.0)
    h2 = jnp.maximum(h1 @ params["w2"].T + params["b2"], 0.0)
    mean = h2 @ params["wm"].T + params["bm"]
    log_std = jnp.clip(h2 @ params["ws"].T + params["bs"], LOG_STD_MIN, LOG_STD_MAX)
    return mean, log_std


if __name__ == "__main__":
    num_inputs, num_actions, hidden_size = 16, 4, 32

    key = jax.random.PRNGKey(0)
    k_params, k_s1, k_s2 = jax.random.split(key, 3)

    params = init_params(k_params, num_inputs, num_actions, hidden_size)
    slab, cfg = pack_params(params, num_inputs, num_actions, hidden_size)

    # Case 1: tiny batch, single grid step.
    state = jax.random.normal(k_s1, (8, num_inputs), dtype=jnp.float32)
    mean, log_std = policy_forward(state, slab, cfg)
    jax.block_until_ready((mean, log_std))
    ref_mean, ref_log_std = reference_forward(state, params)
    assert mean.shape == (8, num_actions) and log_std.shape == (8, num_actions)
    assert jnp.allclose(mean, ref_mean, atol=1e-5), "mean mismatch"
    assert jnp.allclose(log_std, ref_log_std, atol=1e-5), "log_std mismatch"

    # Case 2: non-multiple batch with a multi-step "parallel" batch grid
    # (exercises batch tiling + padding path).
    state2 = jax.random.normal(k_s2, (20, num_inputs), dtype=jnp.float32)
    mean2, log_std2 = policy_forward(state2, slab, cfg, batch_tile=8)
    jax.block_until_ready((mean2, log_std2))
    ref_mean2, ref_log_std2 = reference_forward(state2, params)
    assert jnp.allclose(mean2, ref_mean2, atol=1e-5), "mean mismatch (tiled)"
    assert jnp.allclose(log_std2, ref_log_std2, atol=1e-5), "log_std mismatch (tiled)"

    # TODO(synk): evaluate()/get_action() sampling (Normal.sample, tanh squash,
    # log_prob) is stochastic policy logic outside forward(); intentionally not in-kernel.

    print("KERNEL_OK")
</pallas_src>

<mosaic_0001>
module attributes {stable_mosaic.version = 11 : i64} {
  func.func @_policy_kernel(%arg0: i32, %arg1: memref<8x16xf32, #tpu.memory_space<vmem>>, %arg2: memref<296x128xf32, #tpu.memory_space<vmem>>, %arg3: memref<8x128xf32, #tpu.memory_space<vmem>>) attributes {dimension_semantics = [#tpu.dimension_semantics<parallel>], iteration_bounds = array<i64: 1>, scalar_prefetch = 0 : i64, scratch_operands = 0 : i64, tpu.core_type = #tpu.core_type<tc>, window_params = [{transform_indices = @transform_0, window_bounds = array<i64: 8, 16>}, {pipeline_mode = #tpu.pipeline_mode<synchronous>, transform_indices = @transform_1, window_bounds = array<i64: 296, 128>}, {transform_indices = @transform_2, window_bounds = array<i64: 8, 128>}]} {
    %c0 = arith.constant 0 : index
    %c0_0 = arith.constant 0 : index
    %0 = vector.load %arg1[%c0, %c0_0] : memref<8x16xf32, #tpu.memory_space<vmem>>, vector<8x16xf32>
    %c0_1 = arith.constant 0 : index
    %c0_2 = arith.constant 0 : index
    %1 = vector.load %arg2[%c0_1, %c0_2] : memref<296x128xf32, #tpu.memory_space<vmem>>, vector<16x128xf32>
    %c16 = arith.constant 16 : index
    %c0_3 = arith.constant 0 : index
    %2 = vector.load %arg2[%c16, %c0_3] : memref<296x128xf32, #tpu.memory_space<vmem>>, vector<1x128xf32>
    %cst = arith.constant dense<0.000000e+00> : vector<8x128xf32>
    %3 = tpu.matmul %0, %1, %cst {dimension_numbers = #tpu.dot_dimension_numbers<[1], [0], [0], [1], [0, 0, 1, 1], [], []>} : vector<8x16xf32>, vector<16x128xf32>, vector<8x128xf32> -> vector<8x128xf32>
    %4 = vector.broadcast %2 : vector<1x128xf32> to vector<8x128xf32>
    %5 = arith.addf %3, %4 : vector<8x128xf32>
    %cst_4 = arith.constant 0.000000e+00 : f32
    %6 = vector.broadcast %cst_4 : f32 to vector<8x128xf32>
    %7 = arith.maximumf %5, %6 : vector<8x128xf32>
    %c24 = arith.constant 24 : index
    %c0_5 = arith.constant 0 : index
    %8 = vector.load %arg2[%c24, %c0_5] : memref<296x128xf32, #tpu.memory_space<vmem>>, vector<128x128xf32>
    %c152 = arith.constant 152 : index
    %c0_6 = arith.constant 0 : index
    %9 = vector.load %arg2[%c152, %c0_6] : memref<296x128xf32, #tpu.memory_space<vmem>>, vector<1x128xf32>
    %cst_7 = arith.constant dense<0.000000e+00> : vector<8x128xf32>
    %10 = tpu.matmul %7, %8, %cst_7 {dimension_numbers = #tpu.dot_dimension_numbers<[1], [0], [0], [1], [0, 0, 1, 1], [], []>} : vector<8x128xf32>, vector<128x128xf32>, vector<8x128xf32> -> vector<8x128xf32>
    %11 = vector.broadcast %9 : vector<1x128xf32> to vector<8x128xf32>
    %12 = arith.addf %10, %11 : vector<8x128xf32>
    %cst_8 = arith.constant 0.000000e+00 : f32
    %13 = vector.broadcast %cst_8 : f32 to vector<8x128xf32>
    %14 = arith.maximumf %12, %13 : vector<8x128xf32>
    %c160 = arith.constant 160 : index
    %c0_9 = arith.constant 0 : index
    %15 = vector.load %arg2[%c160, %c0_9] : memref<296x128xf32, #tpu.memory_space<vmem>>, vector<128x128xf32>
    %c288 = arith.constant 288 : index
    %c0_10 = arith.constant 0 : index
    %16 = vector.load %arg2[%c288, %c0_10] : memref<296x128xf32, #tpu.memory_space<vmem>>, vector<1x128xf32>
    %cst_11 = arith.constant dense<0.000000e+00> : vector<8x128xf32>
    %17 = tpu.matmul %14, %15, %cst_11 {dimension_numbers = #tpu.dot_dimension_numbers<[1], [0], [0], [1], [0, 0, 1, 1], [], []>} : vector<8x128xf32>, vector<128x128xf32>, vector<8x128xf32> -> vector<8x128xf32>
    %18 = vector.broadcast %16 : vector<1x128xf32> to vector<8x128xf32>
    %19 = arith.addf %17, %18 : vector<8x128xf32>
    %20 = tpu.iota {dimensions = array<i32: 1>} : vector<8x128xi32>
    %c4_i32 = arith.constant 4 : i32
    %21 = vector.broadcast %c4_i32 : i32 to vector<8x128xi32>
    %22 = arith.cmpi sge, %20, %21 : vector<8x128xi32>
    %c8_i32 = arith.constant 8 : i32
    %23 = vector.broadcast %c8_i32 : i32 to vector<8x128xi32>
    %24 = arith.cmpi slt, %20, %23 : vector<8x128xi32>
    %25 = arith.andi %22, %24 : vector<8x128xi1>
    %cst_12 = arith.constant -1.000000e+01 : f32
    %cst_13 = arith.constant 2.000000e+00 : f32
    %26 = vector.broadcast %cst_12 : f32 to vector<8x128xf32>
    %27 = arith.maximumf %26, %19 : vector<8x128xf32>
    %28 = vector.broadcast %cst_13 : f32 to vector<8x128xf32>
    %29 = arith.minimumf %28, %27 : vector<8x128xf32>
    %30 = arith.select %25, %29, %19 : vector<8x128xi1>, vector<8x128xf32>
    %c0_14 = arith.constant 0 : index
    %c0_15 = arith.constant 0 : index
    %31 = vector.load %arg3[%c0_14, %c0_15] : memref<8x128xf32, #tpu.memory_space<vmem>>, vector<8x128xf32>
    tpu.vector_store %arg3[%c0_14, %c0_15], %30 {strides = array<i32>} : memref<8x128xf32, #tpu.memory_space<vmem>>, vector<8x128xf32>,
    return
  }
  func.func @transform_0(%arg0: i32) -> (i32, i32) {
    %c0_i32 = arith.constant 0 : i32
    %c0_i32_0 = arith.constant 0 : i32
    return %arg0, %c0_i32 : i32, i32
  }
  func.func @transform_1(%arg0: i32) -> (i32, i32) {
    %c0_i32 = arith.constant 0 : i32
    %c0_i32_0 = arith.constant 0 : i32
    %c0_i32_1 = arith.constant 0 : i32
    return %c0_i32, %c0_i32_0 : i32, i32
  }
  func.func @transform_2(%arg0: i32) -> (i32, i32) {
    %c0_i32 = arith.constant 0 : i32
    %c0_i32_0 = arith.constant 0 : i32
    return %arg0, %c0_i32 : i32, i32
  }
}

</mosaic_0001>

<bundles_post_ra>
// kernel: tpu_custom_call.1
= control target key start
LH: loop header
LB: loop body
LE: loop exit
PB: predicated region body
PF: predicated region fallthrough
CT: control target
= control target key end

     0   :  { %7 = vsyncpa [#allocation3], 0  ;;  %s591_s0 = inlined_call_operand.hbm [shape: f32[8,16], index: 0, kind: input, shape index: {}]   ;;  %s592_s1 = inlined_call_operand.hbm [shape: f32[296,128], index: 1, kind: input, shape index: {}]   ;;  %s593_s2 = inlined_call_operand.hbm [shape: f32[8,128], index: 2, kind: output, shape index: {}]  }
   0x1   :  { %8 = vsyncpa [#allocation6], 0 }
   0x2   :  { %9 = vsyncpa [#allocation4], 0  ;;  %s520_s9 = smov [#allocation2]   ;;  %s521_s11 = smov [#allocation5]  }
   0x3   :  { %s16_s10 = sshll.u32 %s520_s9, 4  ;;  %s25_s12 = sshll.u32 %s521_s11, 4  ;;  %s17_s10 = int_to_ptr.vmem [resolvable:$true] %s16_s10  ;;  %s26_s12 = int_to_ptr.vmem [resolvable:$true] %s25_s12 }
   0x4   :  { %s462_s13 = scalar_lea.vmem %s17_s10, 128  ;;  %p467_p1 = scmp.lt.s32.totalorder %s17_s10, %s17_s10 }
   0x5   :  { %p463_p0 = scmp.ne.s32.totalorder %s17_s10, %s462_s13  ;;  %p468_p2 = scmp.lt.s32.totalorder %s462_s13, %s462_s13 }
   0x7   :  { %p469_p3 = por %p468_p2, %p467_p1 }
   0x9   :  { %p470_p4 = pnand %p469_p3, %p463_p0 }
   0xb   :  { %473 = shalt.err (!%p470_p4)
}
   0xc   :  { %19 = dma.hbm_to_vmem [thread:$0]  %s591_s0, 128, %s17_s10, [#allocation3]  }
   0xd   :  { %s482_s16 = scalar_lea.vmem %s26_s12, 4736  ;;  %p487_p6 = scmp.lt.s32.totalorder %s26_s12, %s26_s12 }
   0xe   :  { %p483_p5 = scmp.ne.s32.totalorder %s26_s12, %s482_s16  ;;  %p488_p7 = scmp.lt.s32.totalorder %s482_s16, %s482_s16 }
  0x10   :  { %p489_p8 = por %p488_p7, %p487_p6 }
  0x12   :  { %p490_p9 = pnand %p489_p8, %p483_p5 }
  0x14   :  { %493 = shalt.err (!%p490_p9)
}
  0x15   :  { %s522_s17 = smov 128   ;;  %s523_s18 = smov 8  }
  0x16   :  { %31 = dma.hbm_to_vmem [thread:$0]  %s592_s1, 4736, %s26_s12, [#allocation6], %s522_s17, %s522_s17, %s523_s18  }
  0x17   :  { %514 = dma.done.wait [#allocation3], 128  }
  0x18   :  { %515 = vsyncadd [#allocation3], 4294967168 }
  0x19   :  { %516 = dma.done.wait [#allocation6], 4736  }
  0x1a   :  { %517 = vsyncadd [#allocation6], 4294962560  ;;  %v524_v0 = vmov 0.0   ;;  %vm525_vm0 = vmmov 0   ;;  %v40_v1 = vld [vmem:[#allocation5 + $0x8] sm:$0xff]  ;;  %v39_v2 = vld [vmem:[#allocation5] sm:$0xff]  ;;  %v304_v46 = vlaneseq }
  0x1b   :  { %370 = vmatprep.subr.mxu0 %v524_v0  ;;  %374 = vmatprep.mubr.msk.f32.mxu0 %vm525_vm0, %v524_v0  ;;  %v38_v3 = vld [vmem:[#allocation2] sm:$0xff]  ;;  %vm46_vm1 = vcmask 130048   ;;  %v136_v4 = vld [vmem:[#allocation5 + $0x90] sm:$0xff]  ;;  %v135_v5 = vld [vmem:[#allocation5 + $0x88] sm:$0xff]  ;;  %s526_s0 = smov [#allocation7]  }
  0x1c   :  { %377 = vmatprep.subr.mxu1 %v524_v0  ;;  %409 = vmatprep.mubr.msk.f32.mxu1 %vm525_vm0, %v524_v0  ;;  %v134_v6 = vld [vmem:[#allocation5 + $0x80] sm:$0xff]  ;;  %v133_v7 = vld [vmem:[#allocation5 + $0x78] sm:$0xff]  ;;  %v132_v8 = vld [vmem:[#allocation5 + $0x70] sm:$0xff]  ;;  %v305_v47 = vand.u32 127, %v304_v46  ;;  %s319_s1 = sshll.u32 %s526_s0, 4  ;;  %s320_s1 = int_to_ptr.vmem [resolvable:$true] %s319_s1 }
  0x1d   :  { %371 = vmatpush3.msra.mxu0 %v40_v1  ;;  %378 = vmatpush3.msra.mxu1 %v136_v4  ;;  %v131_v9 = vld [vmem:[#allocation5 + $0x68] sm:$0xff]  ;;  %v130_v10 = vld [vmem:[#allocation5 + $0x60] sm:$0xff]  ;;  %v129_v11 = vld [vmem:[#allocation5 + $0x58] sm:$0xff]  ;;  %s494_s21 = scalar_lea.vmem %s320_s1, 128  ;;  %p499_p11 = scmp.lt.s32.totalorder %s320_s1, %s320_s1 }
  0x1e   :  { %372 = vmatprep.subr.mxu0 %v524_v0  ;;  %379 = vmatprep.subr.mxu1 %v524_v0  ;;  %v128_v12 = vld [vmem:[#allocation5 + $0x50] sm:$0xff]  ;;  %v127_v13 = vld [vmem:[#allocation5 + $0x48] sm:$0xff]  ;;  %v126_v14 = vld [vmem:[#allocation5 + $0x40] sm:$0xff]  ;;  %vm306_vm2 = vcmp.ge.s32.totalorder %v305_v47, 4  ;;  %vm307_vm3 = vcmp.lt.s32.totalorder %v305_v47, 8  ;;  %p495_p10 = scmp.ne.s32.totalorder %s320_s1, %s494_s21  ;;  %p500_p12 = scmp.lt.s32.totalorder %s494_s21, %s494_s21 }
  0x1f   :  { %373 = vmatpush3.msra.mxu0 %v39_v2  ;;  %380 = vmatpush3.msra.mxu1 %v135_v5  ;;  %v125_v15 = vld [vmem:[#allocation5 + $0x38] sm:$0xff]  ;;  %v124_v16 = vld [vmem:[#allocation5 + $0x30] sm:$0xff]  ;;  %v123_v17 = vld [vmem:[#allocation5 + $0x28] sm:$0xff] }
  0x20   :  { %375 = vmatmul.mubr.msk.f32.vlgmr.msra.gmra.mxu0 %vm46_vm1, %v38_v3  ;;  %381 = vmatprep.subr.mxu1 %v524_v0  ;;  %v122_v18 = vld [vmem:[#allocation5 + $0x20] sm:$0xff]  ;;  %v121_v19 = vld [vmem:[#allocation5 + $0x18] sm:$0xff]  ;;  %v227_v21 = vld [vmem:[#allocation5 + $0x110] sm:$0xff]  ;;  %p501_p13 = por %p500_p12, %p499_p11 }
  0x21   :  { %412 = vmatprep.subr.mxu0 %v524_v0  ;;  %382 = vmatpush3.msra.mxu1 %v134_v6  ;;  %v228_v20 = vld [vmem:[#allocation5 + $0x118] sm:$0xff]  ;;  %v226_v22 = vld [vmem:[#allocation5 + $0x108] sm:$0xff]  ;;  %v225_v23 = vld [vmem:[#allocation5 + $0x100] sm:$0xff] }
  0x22   :  { %444 = vmatprep.mubr.msk.f32.mxu0 %vm525_vm0, %v524_v0  ;;  %383 = vmatprep.subr.mxu1 %v524_v0  ;;  %v224_v24 = vld [vmem:[#allocation5 + $0xf8] sm:$0xff]  ;;  %v223_v25 = vld [vmem:[#allocation5 + $0xf0] sm:$0xff]  ;;  %v222_v26 = vld [vmem:[#allocation5 + $0xe8] sm:$0xff]  ;;  %p502_p0 = pnand %p501_p13, %p495_p10 }
  0x23   :  { %384 = vmatpush3.msra.mxu1 %v133_v7  ;;  %413 = vmatpush3.msra.mxu0 %v228_v20  ;;  %v221_v27 = vld [vmem:[#allocation5 + $0xe0] sm:$0xff]  ;;  %v220_v28 = vld [vmem:[#allocation5 + $0xd8] sm:$0xff]  ;;  %v219_v29 = vld [vmem:[#allocation5 + $0xd0] sm:$0xff] }
  0x24   :  { %385 = vmatprep.subr.mxu1 %v524_v0  ;;  %414 = vmatprep.subr.mxu0 %v524_v0  ;;  %v218_v30 = vld [vmem:[#allocation5 + $0xc8] sm:$0xff]  ;;  %v217_v31 = vld [vmem:[#allocation5 + $0xc0] sm:$0xff]  ;;  %v216_v32 = vld [vmem:[#allocation5 + $0xb8] sm:$0xff] }
  0x25   :  { %386 = vmatpush3.msra.mxu1 %v132_v8  ;;  %415 = vmatpush3.msra.mxu0 %v227_v21  ;;  %v329_v33 = vld [vmem:[#allocation5 + $0x10] ss:$0 sm:$0xff]  ;;  %v214_v39 = vld [vmem:[#allocation5 + $0xa8] sm:$0xff]  ;;  %v213_v40 = vld [vmem:[#allocation5 + $0xa0] sm:$0xff] }
  0x26   :  { %387 = vmatprep.subr.mxu1 %v524_v0  ;;  %416 = vmatprep.subr.mxu0 %v524_v0  ;;  %v215_v38 = vld [vmem:[#allocation5 + $0xb0] sm:$0xff]  ;;  %v331_v41 = vld [vmem:[#allocation5 + $0x98] ss:$0 sm:$0xff]  ;;  %v332_v48 = vld [vmem:[#allocation5 + $0x120] ss:$0 sm:$0xff] }
  0x27   :  { %388 = vmatpush3.msra.mxu1 %v131_v9  ;;  %417 = vmatpush3.msra.mxu0 %v226_v22  ;;  %vm308_vm4 = vmand %vm306_vm2, %vm307_vm3 }
  0x28   :  { %389 = vmatprep.subr.mxu1 %v524_v0  ;;  %418 = vmatprep.subr.mxu0 %v524_v0 }
  0x29   :  { %390 = vmatpush3.msra.mxu1 %v130_v10  ;;  %419 = vmatpush3.msra.mxu0 %v225_v23 }
  0x2a   :  { %391 = vmatprep.subr.mxu1 %v524_v0  ;;  %420 = vmatprep.subr.mxu0 %v524_v0 }
  0x2b   :  { %392 = vmatpush3.msra.mxu1 %v129_v11  ;;  %421 = vmatpush3.msra.mxu0 %v224_v24 }
  0x2c   :  { %393 = vmatprep.subr.mxu1 %v524_v0  ;;  %422 = vmatprep.subr.mxu0 %v524_v0 }
  0x2d   :  { %394 = vmatpush3.msra.mxu1 %v128_v12  ;;  %423 = vmatpush3.msra.mxu0 %v223_v25 }
  0x2e   :  { %395 = vmatprep.subr.mxu1 %v524_v0  ;;  %424 = vmatprep.subr.mxu0 %v524_v0 }
  0x2f   :  { %396 = vmatpush3.msra.mxu1 %v127_v13  ;;  %425 = vmatpush3.msra.mxu0 %v222_v26 }
  0x30   :  { %397 = vmatprep.subr.mxu1 %v524_v0  ;;  %426 = vmatprep.subr.mxu0 %v524_v0 }
  0x31   :  { %398 = vmatpush3.msra.mxu1 %v126_v14  ;;  %427 = vmatpush3.msra.mxu0 %v221_v27 }
  0x32   :  { %399 = vmatprep.subr.mxu1 %v524_v0  ;;  %428 = vmatprep.subr.mxu0 %v524_v0 }
  0x33   :  { %400 = vmatpush3.msra.mxu1 %v125_v15  ;;  %429 = vmatpush3.msra.mxu0 %v220_v28 }
  0x34   :  { %401 = vmatprep.subr.mxu1 %v524_v0  ;;  %430 = vmatprep.subr.mxu0 %v524_v0 }
  0x35   :  { %402 = vmatpush3.msra.mxu1 %v124_v16  ;;  %431 = vmatpush3.msra.mxu0 %v219_v29 }
  0x36   :  { %403 = vmatprep.subr.mxu1 %v524_v0  ;;  %432 = vmatprep.subr.mxu0 %v524_v0 }
  0x37   :  { %404 = vmatpush3.msra.mxu1 %v123_v17  ;;  %433 = vmatpush3.msra.mxu0 %v218_v30 }
  0x38   :  { %405 = vmatprep.subr.mxu1 %v524_v0  ;;  %434 = vmatprep.subr.mxu0 %v524_v0 }
  0x39   :  { %406 = vmatpush3.msra.mxu1 %v122_v18  ;;  %435 = vmatpush3.msra.mxu0 %v217_v31 }
  0x3a   :  { %407 = vmatprep.subr.mxu1 %v524_v0  ;;  %436 = vmatprep.subr.mxu0 %v524_v0 }
  0x3b   :  { %408 = vmatpush3.msra.mxu1 %v121_v19  ;;  %437 = vmatpush3.msra.mxu0 %v216_v32 }
  0x3c   :  { %438 = vmatprep.subr.mxu0 %v524_v0 }
  0x3d   :  { %439 = vmatpush3.msra.mxu0 %v215_v38 }
  0x3e   :  { %440 = vmatprep.subr.mxu0 %v524_v0 }
  0x3f   :  { %441 = vmatpush3.msra.mxu0 %v214_v39 }
  0x40   :  { %442 = vmatprep.subr.mxu0 %v524_v0 }
  0x41   :  { %443 = vmatpush3.msra.mxu0 %v213_v40 }
  0xe0   :  { %v116_v34 = vpop.f32.mrf.mxu0 }
  0xe1   :  { %v117_v35 = vadd.f32 %v329_v33, %v116_v34 }
  0xe2   :  { %v376_v36 = vpop.f32.mrf.mxu0 }
  0xe3   :  { %v120_v37 = vmax.f32 %v117_v35, 0.0 }
  0xe5   :  { %410 = vmatmul.mubr.f32.vlgmr.msra.gmra.mxu1 %v120_v37 }
 0x1a5   :  { %v208_v42 = vpop.f32.mrf.mxu1 }
 0x1a6   :  { %v209_v43 = vadd.f32 %v331_v41, %v208_v42 }
 0x1a7   :  { %v411_v44 = vpop.f32.mrf.mxu1 }
 0x1a8   :  { %v212_v45 = vmax.f32 %v209_v43, 0.0 }
 0x1aa   :  { %445 = vmatmul.mubr.f32.vlgmr.msra.gmra.mxu0 %v212_v45 }
 0x26a   :  { %v300_v49 = vpop.f32.mrf.mxu0 }
 0x26b   :  { %v301_v50 = vadd.f32 %v332_v48, %v300_v49 }
 0x26c   :  { %v446_v51 = vpop.f32.mrf.mxu0 }
 0x26d   :  { %v309_v52 = vmax.f32 %v301_v50, -10.0 }
 0x26f   :  { %v310_v53 = vmin.f32 %v309_v52, 2.0 }
 0x271   :  { %v311_v54 = vsel %vm308_vm4, %v310_v53, %v301_v50 }
 0x272   :  { %312 = vst [vmem:[#allocation7] sm:$0xff] %v311_v54 }
 0x273   :  { %505 = shalt.err (!%p502_p0)
}
 0x274   :  { %322 = dma.vmem_to_hbm [thread:$0]  %s320_s1, 128, %s593_s2, [#allocation4]  }
 0x275   :  { %518 = dma.done.wait [#allocation4], 128  }
 0x276   :  { %519 = vsyncadd [#allocation4], 4294967168 }
 0x277   :  { %326 = vsyncpa [#allocation3], 1 }
 0x278   :  { %327 = vsyncpa [#allocation6], 1 }
 0x279   :  { %328 = vsyncpa [#allocation4], 1 }

</bundles_post_ra>
